<compile_context>
chip_gen: v6e
topology: v6e:2x2x1
jax: 0.10.0
libtpu: 0.0.40
codegen_flags: <defaults>
</compile_context>

<pallas_src>
import functools

import jax
import jax.numpy as jnp
from jax.experimental import pallas as pl
from jax.experimental.pallas import tpu as pltpu


def _round_up(a, b):
    return -(-a // b) * b


def _choose_channel_tiles(cin, cout, tk_cap, tn_cap):
    """Pick padded channel sizes and tile widths (all multiples of 128)."""
    assert tk_cap % 128 == 0 and tn_cap % 128 == 0
    cin_p = _round_up(cin, 128)
    if cin_p <= tk_cap:
        tk = cin_p                       # single K step (no reduction loop)
    else:
        tk = tk_cap
        cin_p = _round_up(cin, tk)
    cout_p = _round_up(cout, 128)
    if cout_p <= tn_cap:
        tn = cout_p                      # single Cout tile
    else:
        tn = tn_cap
        cout_p = _round_up(cout, tn)
    return cin_p, tk, cout_p, tn


# ----------------------------------------------------------------------------
# One-time parameter preprocessing (hoisted out of the per-call forward path).
# ----------------------------------------------------------------------------
def prepare_params(params, tk_cap=1280, tn_cap=1280):
    """Cast/transpose/pad the parameters once.

    Returns (arrays, meta):
      arrays = (w_p, g1_p, be1_p, g2_p, be2_p)   — device arrays, padded
      meta   = dict of static Python ints for the forward fn.
    """
    g1, be1, g2, be2, w_conv = params
    cout, cin = w_conv.shape
    cin_p, tk, cout_p, tn = _choose_channel_tiles(cin, cout, tk_cap, tn_cap)

    # bf16 cast BEFORE transpose/pad: no padded fp32 (cin_p, cout_p) intermediate.
    w_bf = jnp.asarray(w_conv, jnp.bfloat16).T                    # (Cin, Cout)
    w_p = jnp.pad(w_bf, ((0, cin_p - cin), (0, cout_p - cout)))   # bf16, padded

    g1_p = jnp.pad(jnp.asarray(g1, jnp.float32), (0, cin_p - cin))[None, :]
    be1_p = jnp.pad(jnp.asarray(be1, jnp.float32), (0, cin_p - cin))[None, :]
    g2_p = jnp.pad(jnp.asarray(g2, jnp.float32), (0, cout_p - cout))[None, :]
    be2_p = jnp.pad(jnp.asarray(be2, jnp.float32), (0, cout_p - cout))[None, :]

    arrays = (w_p, g1_p, be1_p, g2_p, be2_p)
    meta = dict(cout=cout, tk=tk, tn=tn)
    return arrays, meta


# ----------------------------------------------------------------------------
# Fused kernel: BN1(stats+affine) + ReLU + 1x1-conv matmul + BN2(stats+affine).
# Grid = (Cout tiles j [parallel], Cin tiles k [arbitrary reduction, last]).
# ----------------------------------------------------------------------------
def _fused_bn_relu_conv_bn_kernel(g1_ref, be1_ref, g2_ref, be2_ref,
                                  x_ref, w_ref, o_ref,
                                  *, tk, m_valid, eps):
    k = pl.program_id(1)

    @pl.when(k == 0)
    def _():
        o_ref[...] = jnp.zeros_like(o_ref)       # accumulate directly in o_ref

    koff = pl.multiple_of(k * tk, tk)
    xk = x_ref[:, pl.ds(koff, tk)]               # (mp, tk) fp32, VMEM-resident
    g1 = g1_ref[:, pl.ds(koff, tk)]              # (1, tk)
    be1 = be1_ref[:, pl.ds(koff, tk)]            # (1, tk)

    inv_m = 1.0 / m_valid
    # BN1 batch statistics for this K slab, computed in-kernel (x is fully
    # resident).  Padded rows of x are exact zeros, so column sums over the
    # padded block equal sums over the valid M rows; divide by M (biased var).
    s1 = jnp.sum(xk, axis=0, keepdims=True)
    s2 = jnp.sum(xk * xk, axis=0, keepdims=True)
    mean1 = s1 * inv_m
    var1 = jnp.maximum(s2 * inv_m - mean1 * mean1, 0.0)
    a1 = g1 * jax.lax.rsqrt(var1 + eps)
    b1 = be1 - mean1 * a1

    xn = jnp.maximum(xk * a1 + b1, 0.0)          # BN1 + ReLU in fp32 (VPU)

    # bf16 operands, fp32 accumulation on the MXU.
    o_ref[...] += jnp.dot(xn.astype(jnp.bfloat16), w_ref[...],
                          preferred_element_type=jnp.float32)

    @pl.when(k == pl.num_programs(1) - 1)
    def _():
        # BN2 fused into the last-K epilogue: statistics are per output channel
        # and fully determined inside this Cout tile once the K loop is done.
        y = o_ref[...]                           # (mp, tn) fp32
        mp, tn = y.shape
        if m_valid < mp:
            # Padded rows of y are nonzero (ReLU(b1) @ W); mask them ONLY for
            # the statistics — valid rows are unaffected, padded rows are
            # sliced off by the wrapper.
            rows = jax.lax.broadcasted_iota(jnp.int32, (mp, tn), 0)
            ym = jnp.where(rows < m_valid, y, 0.0)
        else:
            ym = y
        cs = jnp.sum(ym, axis=0, keepdims=True)
        cq = jnp.sum(ym * ym, axis=0, keepdims=True)
        mean2 = cs * inv_m
        var2 = jnp.maximum(cq * inv_m - mean2 * mean2, 0.0)
        a2 = g2_ref[...] * jax.lax.rsqrt(var2 + eps)
        b2 = be2_ref[...] - mean2 * a2
        o_ref[...] = y * a2 + b2


def fused_bn_relu_conv_bn(g1_p, be1_p, g2_p, be2_p, x_p, w_p,
                          *, tk, tn, m_valid, eps):
    mp, cin_p = x_p.shape
    cout_p = w_p.shape[1]
    nj = cout_p // tn
    nk = cin_p // tk
    kernel = functools.partial(_fused_bn_relu_conv_bn_kernel,
                               tk=tk, m_valid=m_valid, eps=eps)
    return pl.pallas_call(
        kernel,
        out_shape=jax.ShapeDtypeStruct((mp, cout_p), jnp.float32),
        grid_spec=pltpu.PrefetchScalarGridSpec(
            num_scalar_prefetch=0,
            grid=(nj, nk),
            in_specs=[
                pl.BlockSpec((1, cin_p), lambda j, k: (0, 0)),    # gamma1 (resident)
                pl.BlockSpec((1, cin_p), lambda j, k: (0, 0)),    # beta1  (resident)
                pl.BlockSpec((1, tn), lambda j, k: (0, j)),       # gamma2 tile
                pl.BlockSpec((1, tn), lambda j, k: (0, j)),       # beta2  tile
                pl.BlockSpec((mp, cin_p), lambda j, k: (0, 0)),   # x (fully resident)
                pl.BlockSpec((tk, tn), lambda j, k: (k, j)),      # streamed W (bf16)
            ],
            out_specs=pl.BlockSpec((mp, tn), lambda j, k: (0, j)),
        ),
        # ~8 MB peak (double-buffered 3.3 MB bf16 weight panel + resident x +
        # fp32 output block) for the real geometry; 32 MiB scoped limit gives
        # headroom on v5e (16 MiB default) and is safe on v6e/v7x.
        compiler_params=pltpu.CompilerParams(
            dimension_semantics=("parallel", "arbitrary"),
            vmem_limit_bytes=32 * 1024 * 1024),
    )(g1_p, be1_p, g2_p, be2_p, x_p, w_p)


# ----------------------------------------------------------------------------
# Per-call forward (parameters already preprocessed by prepare_params).
# ----------------------------------------------------------------------------
def module_forward(x_nchw, w_p, g1_p, be1_p, g2_p, be2_p,
                   *, cout, tk, tn, eps=1e-5):
    N, C, H, W = x_nchw.shape
    M = N * H * W
    cin_p, _ = w_p.shape
    mp = _round_up(M, 8)

    # NCHW -> channels-last (M, Cin); the 1x1 conv becomes a plain matmul.
    # Single transpose + pad (no zeros().at[].set() round trip).
    x2d = jnp.transpose(x_nchw, (0, 2, 3, 1)).reshape(M, C).astype(jnp.float32)
    x_p = jnp.pad(x2d, ((0, mp - M), (0, cin_p - C)))

    y_p = fused_bn_relu_conv_bn(g1_p, be1_p, g2_p, be2_p, x_p, w_p,
                                tk=tk, tn=tn, m_valid=M, eps=eps)

    out2d = y_p[:M, :cout]
    return jnp.transpose(out2d.reshape(N, H, W, cout), (0, 3, 1, 2))


if __name__ == "__main__":
    # Small shapes consistent with the module (original: N=1, C=2520, H=W=7).
    N, C, H, W = 2, 320, 7, 7

    key = jax.random.PRNGKey(0)
    kx, kg1, kb1, kg2, kb2, kw = jax.random.split(key, 6)

    x = jax.random.normal(kx, (N, C, H, W), dtype=jnp.float32)
    gamma1 = 1.0 + 0.1 * jax.random.normal(kg1, (C,), dtype=jnp.float32)
    beta1 = 0.1 * jax.random.normal(kb1, (C,), dtype=jnp.float32)
    gamma2 = 1.0 + 0.1 * jax.random.normal(kg2, (C,), dtype=jnp.float32)
    beta2 = 0.1 * jax.random.normal(kb2, (C,), dtype=jnp.float32)
    w_conv = jax.random.normal(kw, (C, C), dtype=jnp.float32) / jnp.sqrt(C)
    params = (gamma1, beta1, gamma2, beta2, w_conv)

    # Small tile caps so this tiny test exercises the same multi-tile code path
    # (multi-step K accumulation, parallel Cout tiles, per-tile BN2 epilogue,
    # row/channel padding) that the real 2520-channel geometry takes with the
    # default 1280 caps.
    arrays, meta = prepare_params(params, tk_cap=128, tn_cap=128)
    fwd = jax.jit(functools.partial(module_forward, **meta))
    out = jax.block_until_ready(fwd(x, *arrays))

    # fp32 reference with the same training-mode BN semantics (biased variance).
    def ref(x):
        eps = 1e-5
        m1 = x.mean(axis=(0, 2, 3), keepdims=True)
        v1 = x.var(axis=(0, 2, 3), keepdims=True)
        xn = (x - m1) / jnp.sqrt(v1 + eps) * gamma1[None, :, None, None] \
             + beta1[None, :, None, None]
        xr = jnp.maximum(xn, 0.0)
        y = jnp.einsum('nchw,oc->nohw', xr, w_conv)
        m2 = y.mean(axis=(0, 2, 3), keepdims=True)
        v2 = y.var(axis=(0, 2, 3), keepdims=True)
        return (y - m2) / jnp.sqrt(v2 + eps) * gamma2[None, :, None, None] \
               + beta2[None, :, None, None]

    r = jax.block_until_ready(ref(x))
    assert out.shape == (N, C, H, W)
    # bf16 MXU operands (fp32 accumulation) -> slightly looser tolerance.
    err = float(jnp.max(jnp.abs(out - r)))
    assert jnp.allclose(out, r, atol=3e-2, rtol=3e-2), err
    print("KERNEL_OK")
</pallas_src>

<mosaic_0001>
module attributes {stable_mosaic.version = 11 : i64} {
  func.func @_fused_bn_relu_conv_bn_kernel(%arg0: i32, %arg1: i32, %arg2: memref<1x384xf32, #tpu.memory_space<vmem>>, %arg3: memref<1x384xf32, #tpu.memory_space<vmem>>, %arg4: memref<1x128xf32, #tpu.memory_space<vmem>>, %arg5: memref<1x128xf32, #tpu.memory_space<vmem>>, %arg6: memref<104x384xf32, #tpu.memory_space<vmem>>, %arg7: memref<128x128xbf16, #tpu.memory_space<vmem>>, %arg8: memref<104x128xf32, #tpu.memory_space<vmem>>) attributes {dimension_semantics = [#tpu.dimension_semantics<parallel>, #tpu.dimension_semantics<arbitrary>], iteration_bounds = array<i64: 3, 3>, scalar_prefetch = 0 : i64, scratch_operands = 0 : i64, tpu.core_type = #tpu.core_type<tc>, window_params = [{pipeline_mode = #tpu.pipeline_mode<synchronous>, transform_indices = @transform_0, window_bounds = array<i64: 1, 384>}, {pipeline_mode = #tpu.pipeline_mode<synchronous>, transform_indices = @transform_1, window_bounds = array<i64: 1, 384>}, {transform_indices = @transform_2, window_bounds = array<i64: 1, 128>}, {transform_indices = @transform_3, window_bounds = array<i64: 1, 128>}, {pipeline_mode = #tpu.pipeline_mode<synchronous>, transform_indices = @transform_4, window_bounds = array<i64: 104, 384>}, {transform_indices = @transform_5, window_bounds = array<i64: 128, 128>}, {transform_indices = @transform_6, window_bounds = array<i64: 104, 128>}]} {
    %c0_i32 = arith.constant 0 : i32
    %0 = arith.cmpi eq, %arg1, %c0_i32 : i32
    %1 = arith.extui %0 : i1 to i32
    %c0_i32_0 = arith.constant 0 : i32
    %2 = arith.cmpi ne, %1, %c0_i32_0 : i32
    scf.if %2 {
      %cst_17 = arith.constant 0.000000e+00 : f32
      %45 = vector.broadcast %cst_17 : f32 to vector<104x128xf32>
      %c0_18 = arith.constant 0 : index
      %c0_19 = arith.constant 0 : index
      %46 = vector.load %arg8[%c0_18, %c0_19] : memref<104x128xf32, #tpu.memory_space<vmem>>, vector<104x128xf32>
      tpu.vector_store %arg8[%c0_18, %c0_19], %45 {strides = array<i32>} : memref<104x128xf32, #tpu.memory_space<vmem>>, vector<104x128xf32>,
    } else {
    }
    %c128_i32 = arith.constant 128 : i32
    %3 = arith.muli %arg1, %c128_i32 : i32
    %4 = tpu.assume_multiple %3, 128 : i32
    %c0 = arith.constant 0 : index
    %5 = arith.index_cast %4 : i32 to index
    %6 = vector.load %arg6[%c0, %5] : memref<104x384xf32, #tpu.memory_space<vmem>>, vector<104x128xf32>
    %c0_1 = arith.constant 0 : index
    %7 = arith.index_cast %4 : i32 to index
    %8 = vector.load %arg2[%c0_1, %7] : memref<1x384xf32, #tpu.memory_space<vmem>>, vector<1x128xf32>
    %c0_2 = arith.constant 0 : index
    %9 = arith.index_cast %4 : i32 to index
    %10 = vector.load %arg3[%c0_2, %9] : memref<1x384xf32, #tpu.memory_space<vmem>>, vector<1x128xf32>
    %cst = arith.constant dense<0.000000e+00> : vector<128xf32>
    %11 = vector.multi_reduction <add>, %6, %cst [0] : vector<104x128xf32> to vector<128xf32>
    %12 = vector.shape_cast %11 : vector<128xf32> to vector<1x128xf32>
    %13 = arith.mulf %6, %6 : vector<104x128xf32>
    %cst_3 = arith.constant dense<0.000000e+00> : vector<128xf32>
    %14 = vector.multi_reduction <add>, %13, %cst_3 [0] : vector<104x128xf32> to vector<128xf32>
    %15 = vector.shape_cast %14 : vector<128xf32> to vector<1x128xf32>
    %cst_4 = arith.constant 0.0102040814 : f32
    %16 = vector.broadcast %cst_4 : f32 to vector<1x128xf32>
    %17 = arith.mulf %12, %16 : vector<1x128xf32>
    %cst_5 = arith.constant 0.0102040814 : f32
    %18 = vector.broadcast %cst_5 : f32 to vector<1x128xf32>
    %19 = arith.mulf %15, %18 : vector<1x128xf32>
    %20 = arith.mulf %17, %17 : vector<1x128xf32>
    %21 = arith.subf %19, %20 : vector<1x128xf32>
    %cst_6 = arith.constant 0.000000e+00 : f32
    %22 = vector.broadcast %cst_6 : f32 to vector<1x128xf32>
    %23 = arith.maximumf %21, %22 : vector<1x128xf32>
    %cst_7 = arith.constant 9.99999974E-6 : f32
    %24 = vector.broadcast %cst_7 : f32 to vector<1x128xf32>
    %25 = arith.addf %23, %24 : vector<1x128xf32>
    %26 = math.rsqrt %25 : vector<1x128xf32>
    %27 = arith.mulf %8, %26 : vector<1x128xf32>
    %28 = arith.mulf %17, %27 : vector<1x128xf32>
    %29 = arith.subf %10, %28 : vector<1x128xf32>
    %30 = vector.broadcast %27 : vector<1x128xf32> to vector<104x128xf32>
    %31 = arith.mulf %6, %30 : vector<104x128xf32>
    %32 = vector.broadcast %29 : vector<1x128xf32> to vector<104x128xf32>
    %33 = arith.addf %31, %32 : vector<104x128xf32>
    %cst_8 = arith.constant 0.000000e+00 : f32
    %34 = vector.broadcast %cst_8 : f32 to vector<104x128xf32>
    %35 = arith.maximumf %33, %34 : vector<104x128xf32>
    %c0_9 = arith.constant 0 : index
    %c0_10 = arith.constant 0 : index
    %36 = vector.load %arg8[%c0_9, %c0_10] : memref<104x128xf32, #tpu.memory_space<vmem>>, vector<104x128xf32>
    %37 = arith.truncf %35 : vector<104x128xf32> to vector<104x128xbf16>
    %c0_11 = arith.constant 0 : index
    %c0_12 = arith.constant 0 : index
    %38 = vector.load %arg7[%c0_11, %c0_12] : memref<128x128xbf16, #tpu.memory_space<vmem>>, vector<128x128xbf16>
    %cst_13 = arith.constant dense<0.000000e+00> : vector<104x128xf32>
    %39 = tpu.matmul %37, %38, %cst_13 {dimension_numbers = #tpu.dot_dimension_numbers<[1], [0], [0], [1], [0, 0, 1, 1], [], []>} : vector<104x128xbf16>, vector<128x128xbf16>, vector<104x128xf32> -> vector<104x128xf32>
    %40 = arith.addf %36, %39 : vector<104x128xf32>
    %c0_14 = arith.constant 0 : index
    %c0_15 = arith.constant 0 : index
    %41 = vector.load %arg8[%c0_14, %c0_15] : memref<104x128xf32, #tpu.memory_space<vmem>>, vector<104x128xf32>
    tpu.vector_store %arg8[%c0_14, %c0_15], %40 {strides = array<i32>} : memref<104x128xf32, #tpu.memory_space<vmem>>, vector<104x128xf32>,
    %c2_i32 = arith.constant 2 : i32
    %42 = arith.cmpi eq, %arg1, %c2_i32 : i32
    %43 = arith.extui %42 : i1 to i32
    %c0_i32_16 = arith.constant 0 : i32
    %44 = arith.cmpi ne, %43, %c0_i32_16 : i32
    scf.if %44 {
      %c0_17 = arith.constant 0 : index
      %c0_18 = arith.constant 0 : index
      %45 = vector.load %arg8[%c0_17, %c0_18] : memref<104x128xf32, #tpu.memory_space<vmem>>, vector<104x128xf32>
      %46 = tpu.iota {dimensions = array<i32: 0>} : vector<104x128xi32>
      %c98_i32 = arith.constant 98 : i32
      %47 = vector.broadcast %c98_i32 : i32 to vector<104x128xi32>
      %48 = arith.cmpi slt, %46, %47 : vector<104x128xi32>
      %cst_19 = arith.constant 0.000000e+00 : f32
      %49 = vector.broadcast %cst_19 : f32 to vector<104x128xf32>
      %50 = arith.select %48, %45, %49 : vector<104x128xi1>, vector<104x128xf32>
      %cst_20 = arith.constant dense<0.000000e+00> : vector<128xf32>
      %51 = vector.multi_reduction <add>, %50, %cst_20 [0] : vector<104x128xf32> to vector<128xf32>
      %52 = vector.shape_cast %51 : vector<128xf32> to vector<1x128xf32>
      %53 = arith.mulf %50, %50 : vector<104x128xf32>
      %cst_21 = arith.constant dense<0.000000e+00> : vector<128xf32>
      %54 = vector.multi_reduction <add>, %53, %cst_21 [0] : vector<104x128xf32> to vector<128xf32>
      %55 = vector.shape_cast %54 : vector<128xf32> to vector<1x128xf32>
      %cst_22 = arith.constant 0.0102040814 : f32
      %56 = vector.broadcast %cst_22 : f32 to vector<1x128xf32>
      %57 = arith.mulf %52, %56 : vector<1x128xf32>
      %cst_23 = arith.constant 0.0102040814 : f32
      %58 = vector.broadcast %cst_23 : f32 to vector<1x128xf32>
      %59 = arith.mulf %55, %58 : vector<1x128xf32>
      %60 = arith.mulf %57, %57 : vector<1x128xf32>
      %61 = arith.subf %59, %60 : vector<1x128xf32>
      %cst_24 = arith.constant 0.000000e+00 : f32
      %62 = vector.broadcast %cst_24 : f32 to vector<1x128xf32>
      %63 = arith.maximumf %61, %62 : vector<1x128xf32>
      %c0_25 = arith.constant 0 : index
      %c0_26 = arith.constant 0 : index
      %64 = vector.load %arg4[%c0_25, %c0_26] : memref<1x128xf32, #tpu.memory_space<vmem>>, vector<1x128xf32>
      %cst_27 = arith.constant 9.99999974E-6 : f32
      %65 = vector.broadcast %cst_27 : f32 to vector<1x128xf32>
      %66 = arith.addf %63, %65 : vector<1x128xf32>
      %67 = math.rsqrt %66 : vector<1x128xf32>
      %68 = arith.mulf %64, %67 : vector<1x128xf32>
      %c0_28 = arith.constant 0 : index
      %c0_29 = arith.constant 0 : index
      %69 = vector.load %arg5[%c0_28, %c0_29] : memref<1x128xf32, #tpu.memory_space<vmem>>, vector<1x128xf32>
      %70 = arith.mulf %57, %68 : vector<1x128xf32>
      %71 = arith.subf %69, %70 : vector<1x128xf32>
      %72 = vector.broadcast %68 : vector<1x128xf32> to vector<104x128xf32>
      %73 = arith.mulf %45, %72 : vector<104x128xf32>
      %74 = vector.broadcast %71 : vector<1x128xf32> to vector<104x128xf32>
      %75 = arith.addf %73, %74 : vector<104x128xf32>
      %c0_30 = arith.constant 0 : index
      %c0_31 = arith.constant 0 : index
      %76 = vector.load %arg8[%c0_30, %c0_31] : memref<104x128xf32, #tpu.memory_space<vmem>>, vector<104x128xf32>
      tpu.vector_store %arg8[%c0_30, %c0_31], %75 {strides = array<i32>} : memref<104x128xf32, #tpu.memory_space<vmem>>, vector<104x128xf32>,
    } else {
    }
    return
  }
  func.func @transform_0(%arg0: i32, %arg1: i32) -> (i32, i32) {
    %c0_i32 = arith.constant 0 : i32
    %c0_i32_0 = arith.constant 0 : i32
    %c0_i32_1 = arith.constant 0 : i32
    return %c0_i32, %c0_i32_0 : i32, i32
  }
  func.func @transform_1(%arg0: i32, %arg1: i32) -> (i32, i32) {
    %c0_i32 = arith.constant 0 : i32
    %c0_i32_0 = arith.constant 0 : i32
    %c0_i32_1 = arith.constant 0 : i32
    return %c0_i32, %c0_i32_0 : i32, i32
  }
  func.func @transform_2(%arg0: i32, %arg1: i32) -> (i32, i32) {
    %c0_i32 = arith.constant 0 : i32
    %c0_i32_0 = arith.constant 0 : i32
    return %c0_i32, %arg0 : i32, i32
  }
  func.func @transform_3(%arg0: i32, %arg1: i32) -> (i32, i32) {
    %c0_i32 = arith.constant 0 : i32
    %c0_i32_0 = arith.constant 0 : i32
    return %c0_i32, %arg0 : i32, i32
  }
  func.func @transform_4(%arg0: i32, %arg1: i32) -> (i32, i32) {
    %c0_i32 = arith.constant 0 : i32
    %c0_i32_0 = arith.constant 0 : i32
    %c0_i32_1 = arith.constant 0 : i32
    return %c0_i32, %c0_i32_0 : i32, i32
  }
  func.func @transform_5(%arg0: i32, %arg1: i32) -> (i32, i32) {
    %c0_i32 = arith.constant 0 : i32
    return %arg1, %arg0 : i32, i32
  }
  func.func @transform_6(%arg0: i32, %arg1: i32) -> (i32, i32) {
    %c0_i32 = arith.constant 0 : i32
    %c0_i32_0 = arith.constant 0 : i32
    return %c0_i32, %arg0 : i32, i32
  }
}

</mosaic_0001>

<bundles_post_ra>
// kernel: module_forward.1
= control target key start
LH: loop header
LB: loop body
LE: loop exit
PB: predicated region body
PF: predicated region fallthrough
CT: control target
= control target key end

     0   :  { %s1839_s0 = inlined_call_operand.vmem [shape: f32[1,384], index: 0, kind: input, shape index: {}]   ;;  %s1840_s1 = inlined_call_operand.vmem [shape: f32[1,384], index: 1, kind: input, shape index: {}]   ;;  %s1841_s2 = inlined_call_operand.vmem [shape: f32[1,384], index: 2, kind: input, shape index: {}]   ;;  %s1842_s3 = inlined_call_operand.vmem [shape: f32[1,384], index: 3, kind: input, shape index: {}]   ;;  %s1843_s4 = inlined_call_operand.vmem [shape: f32[104,384], index: 4, kind: input, shape index: {}]   ;;  %s1844_s5 = inlined_call_operand.vmem [shape: bf16[384,384], index: 5, kind: input, shape index: {}]   ;;  %s1845_s6 = inlined_call_operand.vmem [shape: f32[104,384], index: 6, kind: output, shape index: {}]  }
   0x1   :  { %1848 = sst [smem:[#allocation6_spill]] %s1844_s5 }
   0x2   :  { %s1393_s21 = smov 0   ;;  %s1395_s22 = smov 0  }
   0x3   :  { %s1397_s23 = smov 0   ;;  %s1399_s24 = smov 0  }
   0x4   :  { %s1401_s25 = smov 0   ;;  %s1403_s26 = smov 0  }
   0x5   :  { %s1405_s27 = smov 0   ;;  %s1407_s28 = smov 0  }
   0x6   :  { %s1409_s29 = smov 0  }
   0x7 LB: > { %s25_s30 = sadd.s32 1, %s1345_s27  ;;  %s28_s7 = sadd.s32 1, %s1349_s28  ;;  %s1353_s29 = sphi %s1409_s29, %s16_s29   ;;  %s1349_s28 = sphi %s1407_s28, %s1863_s28   ;;  %s1345_s27 = sphi %s1405_s27, %s1862_s27   ;;  %s1341_s26 = sphi %s1403_s26, %s1861_s26   ;;  %s1337_s25 = sphi %s1401_s25, %s1860_s25   ;;  %s1333_s24 = sphi %s1399_s24, %s1859_s24   ;;  %s1329_s23 = sphi %s1397_s23, %s1858_s23   ;;  %s1325_s22 = sphi %s1395_s22, %s1857_s22   ;;  %s1321_s21 = sphi %s1393_s21, %s1856_s21  }
   0x8   : > { %p26_p0 = scmp.ge.s32.totalorder %s25_s30, 3  ;;  %p159_p1 = scmp.ne.s32.totalorder %s1333_s24, %s1329_s23 }
   0x9   : > { %s1094_s8 = sadd.s32 4294967295, %s1353_s29   ;;  %p160_p2 = scmp.eq.s32.totalorder %s1353_s29, 0 }
   0xa   : > { %s1865_s30 = smov (%p26_p0, %s25_s30), 0  ;;  %s1867_s7 = smov (!%p26_p0, %s28_s7), %s1349_s28 }
   0xb   : > { %1849 = sst [smem:[#allocation4_spill]] %s1865_s30  ;;  %p30_p3 = scmp.ge.s32.totalorder %s1867_s7, 3 }
   0xc   : > { %s147_s9 = ssub.s32 %s1345_s27, %s1865_s30  ;;  %p1449_p4 = por %p160_p2, %p159_p1 }
   0xd   : > { %p188_p5 = scmp.ne.s32.totalorder %s1325_s22, %s1321_s21  ;;  %s1869_s7 = smov (%p30_p3, %s1867_s7), 0 }
   0xe   : > { %1851 = sst [smem:[#allocation5_spill]] %s1869_s7  ;;  %s152_s11 = sadd.s32 1, %s1333_s24 }
   0xf   : > { %p189_p6 = scmp.eq.s32.totalorder %s1094_s8, 8  ;;  %s148_s12 = ssub.s32 %s1349_s28, %s1869_s7 }
  0x10   : > { %s178_s13 = sadd.s32 1, %s1325_s22  ;;  %s149_s14 = sor.u32 %s148_s12, %s147_s9 }
  0x11   : > { %p176_p7 = scmp.eq.s32.totalorder %s148_s12, 0  ;;  %p150_p8 = scmp.eq.s32.totalorder %s149_s14, 0 }
  0x12   : > { %p1461_p9 = por %p189_p6, %p188_p5  ;;  %p1097_p10 = scmp.ge.s32.totalorder %s1353_s29, 9 }
  0x13   : > { %s1466_s16 = scalar_select %p176_p7, %s1325_s22, %s178_s13  }
  0x14   : > { %s1469_s17 = scalar_select %p150_p8, %s1333_s24, %s152_s11  }
  0x15   : > { %220 = sbr.rel (%p1097_p10) target bundleno = 46 (0x2e), region = 28 }
  0x1a   : > { %235 = sbr.rel (!%p1449_p4) target bundleno = 46 (0x2e), region = 40  ;;  %s237_s18 = sand.u32 (%p1449_p4), 1, %s1333_s24  }
  0x1b   : > { %s1194_s19 = smul.u32 (%p1449_p4), 48, %s1345_s27  ;;  %s1098_s20 = sshll.u32 (%p1449_p4), %s237_s18, 6 }
  0x1c   : > { %s1853_s5 = sld [smem:[#allocation6_spill]] (%p1449_p4)  ;;  %s239_s10 = scalar_lea.vmem (%p1449_p4), [#allocation2], %s1098_s20 }
  0x1d   : > { %s242_s8 = sadd.s32 (%p1449_p4), %s1349_s28, %s1194_s19 }
  0x1e   : > { %s1101_s9 = sshll.u32 (%p1449_p4), %s242_s8, 2 }
  0x22   : > { %s1480_s13 = scalar_lea.vmem %s1853_s5, %s1101_s9 }
  0x23   : > { %v261_v0 = vld [vmem:[%s1480_s13] sm:$0xf]  ;;  %v263_v1 = vld [vmem:[%s1480_s13 + $0xc] sm:$0xf]  ;;  %v265_v2 = vld [vmem:[%s1480_s13 + $0x18] sm:$0xf] }
  0x24   : > { %262 = vst [vmem:[%s239_s10] sm:$0xf] %v261_v0  ;;  %264 = vst [vmem:[%s239_s10 + $0x4] sm:$0xf] %v263_v1  ;;  %v267_v3 = vld [vmem:[%s1480_s13 + $0x24] sm:$0xf] }
  0x25   : > { %266 = vst [vmem:[%s239_s10 + $0x8] sm:$0xf] %v265_v2  ;;  %v269_v4 = vld [vmem:[%s1480_s13 + $0x30] sm:$0xf]  ;;  %v271_v5 = vld [vmem:[%s1480_s13 + $0x3c] sm:$0xf] }
  0x26   : > { %268 = vst [vmem:[%s239_s10 + $0xc] sm:$0xf] %v267_v3  ;;  %270 = vst [vmem:[%s239_s10 + $0x10] sm:$0xf] %v269_v4  ;;  %v273_v6 = vld [vmem:[%s1480_s13 + $0x48] sm:$0xf] }
  0x27   : > { %272 = vst [vmem:[%s239_s10 + $0x14] sm:$0xf] %v271_v5  ;;  %v275_v7 = vld [vmem:[%s1480_s13 + $0x54] sm:$0xf]  ;;  %v277_v8 = vld [vmem:[%s1480_s13 + $0x60] sm:$0xf] }
  0x28   : > { %274 = vst [vmem:[%s239_s10 + $0x18] sm:$0xf] %v273_v6  ;;  %276 = vst [vmem:[%s239_s10 + $0x1c] sm:$0xf] %v275_v7  ;;  %v279_v9 = vld [vmem:[%s1480_s13 + $0x6c] sm:$0xf] }
  0x29   : > { %278 = vst [vmem:[%s239_s10 + $0x20] sm:$0xf] %v277_v8  ;;  %v281_v10 = vld [vmem:[%s1480_s13 + $0x78] sm:$0xf]  ;;  %v283_v11 = vld [vmem:[%s1480_s13 + $0x84] sm:$0xf] }
  0x2a   : > { %280 = vst [vmem:[%s239_s10 + $0x24] sm:$0xf] %v279_v9  ;;  %282 = vst [vmem:[%s239_s10 + $0x28] sm:$0xf] %v281_v10  ;;  %v285_v12 = vld [vmem:[%s1480_s13 + $0x90] sm:$0xf] }
  0x2b   : > { %284 = vst [vmem:[%s239_s10 + $0x2c] sm:$0xf] %v283_v11  ;;  %v287_v13 = vld [vmem:[%s1480_s13 + $0x9c] sm:$0xf]  ;;  %v289_v14 = vld [vmem:[%s1480_s13 + $0xa8] sm:$0xf] }
  0x2c   : > { %286 = vst [vmem:[%s239_s10 + $0x30] sm:$0xf] %v285_v12  ;;  %288 = vst [vmem:[%s239_s10 + $0x34] sm:$0xf] %v287_v13  ;;  %v291_v15 = vld [vmem:[%s1480_s13 + $0xb4] sm:$0xf] }
  0x2d   : > { %290 = vst [vmem:[%s239_s10 + $0x38] sm:$0xf] %v289_v14  ;;  %292 = vst [vmem:[%s239_s10 + $0x3c] sm:$0xf] %v291_v15 }
  0x2e PF: > { %p1102_p11 = scmp.ge.s32.totalorder %s1353_s29, 1  ;;  %p347_p12 = scmp.lt.s32.totalorder %s1353_s29, 10 }
  0x30   : > { %p348_p13 = pnand %p1102_p11, %p347_p12 }
  0x31   : > { %s354_s11 = sand.u32 (!%p348_p13), 1, %s1329_s23   ;;  %s385_s18 = sand.u32 (!%p348_p13), 1, %s1321_s21  }
  0x32   : > { %351 = sbr.rel (%p348_p13) target bundleno = 459 (0x1cb), region = 81  ;;  %s1103_s19 = sshll.u32 (!%p348_p13), %s354_s11, 6 }
  0x33   : > { %s1195_s20 = smul.u32 (!%p348_p13), 104, %s385_s18  ;;  %p388_p0 = scmp.lt.s32.totalorder (!%p348_p13), %s1341_s26, 2 }
  0x34   : > { %s1514_s7 = scalar_lea.vmem (!%p348_p13), [#allocation2], %s1103_s19  ;;  %p1104_p1 = scmp.ne.s32.totalorder (!%p348_p13), %s1337_s25, 0 }
  0x35   : > { %s1516_s30 = scalar_lea.vmem (!%p348_p13), [#allocation3], %s1195_s20 }
  0x37   : > { %s1504_s8 = scalar_select %p388_p0, %s1341_s26, 2 }
  0x38   : > { %399 = sbr.rel (%p1104_p1) target bundleno = 69 (0x45), region = 89 }
  0x39   : > { %s390_s14 = scalar_lea.vmem %s1841_s2, %s1504_s8  ;;  %s393_s5 = scalar_lea.vmem %s1842_s3, %s1504_s8 }
  0x3d   : > { %v1355_v16 = vmov 0.0  }
  0x3e   : > { %400 = vst [vmem:[%s1516_s30] sm:$0xff] %v1355_v16  ;;  %401 = vst [vmem:[%s1516_s30 + $0x8] sm:$0xff] %v1355_v16 }
  0x3f   : > { %402 = vst [vmem:[%s1516_s30 + $0x10] sm:$0xff] %v1355_v16  ;;  %403 = vst [vmem:[%s1516_s30 + $0x18] sm:$0xff] %v1355_v16 }
  0x40   : > { %404 = vst [vmem:[%s1516_s30 + $0x20] sm:$0xff] %v1355_v16  ;;  %405 = vst [vmem:[%s1516_s30 + $0x28] sm:$0xff] %v1355_v16 }
  0x41   : > { %406 = vst [vmem:[%s1516_s30 + $0x30] sm:$0xff] %v1355_v16  ;;  %407 = vst [vmem:[%s1516_s30 + $0x38] sm:$0xff] %v1355_v16 }
  0x42   : > { %408 = vst [vmem:[%s1516_s30 + $0x40] sm:$0xff] %v1355_v16  ;;  %409 = vst [vmem:[%s1516_s30 + $0x48] sm:$0xff] %v1355_v16 }
  0x43   : > { %410 = vst [vmem:[%s1516_s30 + $0x50] sm:$0xff] %v1355_v16  ;;  %411 = vst [vmem:[%s1516_s30 + $0x58] sm:$0xff] %v1355_v16 }
  0x44   : > { %412 = vst [vmem:[%s1516_s30 + $0x60] sm:$0xff] %v1355_v16 }
  0x45 PF: > { %v1271_v17 = vld [vmem:[%s1514_s7 + $0x38] sm:$0xff]   ;;  %v1356_v18 = vmov 0.0   ;;  %v1272_v19 = vld [vmem:[%s1514_s7 + $0x30] sm:$0xff]   ;;  %s1105_s21 = sshll.u32 %s1337_s25, 7  ;;  %vm1357_vm0 = vmmov 0   ;;  %v1273_v20 = vld [vmem:[%s1514_s7 + $0x28] sm:$0xff]  }
  0x46   : > { %1134 = vmatprep.subr.bf16.mxu0 %v1356_v18  ;;  %1178 = vmatprep.subr.bf16.mxu1 %v1356_v18  ;;  %s1539_s23 = sshra.s32 %s1105_s21, 7  ;;  %v1274_v27 = vld [vmem:[%s1514_s7 + $0x20] sm:$0xff]   ;;  %v1275_v35 = vld [vmem:[%s1514_s7 + $0x18] sm:$0xff]   ;;  %v1276_v44 = vld [vmem:[%s1514_s7 + $0x10] sm:$0xff]   ;;  %p1115_p2 = scmp.ne.s32.totalorder %s1337_s25, 2 }
  0x47   : > { %1135 = vmatpush3.bf16.msra.mxu0 %v1271_v17  ;;  %1186 = vmatpush3.bf16.msra.mxu1 %v1271_v17  ;;  %s1106_s11 = sshll.u32 %s1539_s23, 3  ;;  %v1277_v53 = vld [vmem:[%s1514_s7 + $0x8] sm:$0xff]   ;;  %v1278_v62 = vld [vmem:[%s1514_s7] sm:$0xff]   ;;  %s431_s12 = scalar_lea.vmem %s1839_s0, %s1539_s23 }
  0x48   : > { %1136 = vmatprep.subr.bf16.mxu0 %v1356_v18  ;;  %1179 = vmatprep.subr.bf16.mxu1 %v1356_v18  ;;  %s1549_s20 = scalar_lea.vmem %s1843_s4, %s1106_s11  ;;  %s433_s21 = scalar_lea.vmem %s1840_s1, %s1539_s23 }
  0x49   : > { %1150 = vmatprep.mubr.msk.bf16.mxu0 %vm1357_vm0, %v1356_v18  ;;  %1166 = vmatprep.mubr.msk.bf16.mxu1 %vm1357_vm0, %v1356_v18  ;;  %v1555_v21 = vld [vmem:[%s1549_s20] sm:$0xff]  ;;  %v1558_v22 = vld [vmem:[%s1549_s20 + $0x18] sm:$0xff]  ;;  %v1561_v23 = vld [vmem:[%s1549_s20 + $0x30] sm:$0xff] }
  0x4a   : > { %v435_v24 = vadd.f32 %v1558_v22, %v1555_v21  ;;  %v453_v25 = vmul.f32 %v1555_v21, %v1555_v21  ;;  %v454_v26 = vmul.f32 %v1558_v22, %v1558_v22  ;;  %v1571_v28 = vld [vmem:[%s1549_s20 + $0x48] sm:$0xff]  ;;  %v455_v30 = vmul.f32 %v1561_v23, %v1561_v23  ;;  %v1579_v31 = vld [vmem:[%s1549_s20 + $0x60] sm:$0xff]  ;;  %v1586_v36 = vld [vmem:[%s1549_s20 + $0x78] sm:$0xff] }
  0x4b   : > { %1137 = vmatpush3.bf16.msra.mxu0 %v1272_v19  ;;  %1187 = vmatpush3.bf16.msra.mxu1 %v1272_v19  ;;  %v456_v33 = vmul.f32 %v1571_v28, %v1571_v28  ;;  %v457_v38 = vmul.f32 %v1579_v31, %v1579_v31  ;;  %v1594_v40 = vld [vmem:[%s1549_s20 + $0x90] sm:$0xff]  ;;  %v458_v42 = vmul.f32 %v1586_v36, %v1586_v36  ;;  %v1601_v45 = vld [vmem:[%s1549_s20 + $0xa8] sm:$0xff]  ;;  %v1609_v49 = vld [vmem:[%s1549_s20 + $0xc0] sm:$0xff] }
  0x4c   : > { %1138 = vmatprep.subr.bf16.mxu0 %v1356_v18  ;;  %1180 = vmatprep.subr.bf16.mxu1 %v1356_v18  ;;  %v436_v29 = vadd.f32 %v435_v24, %v1561_v23  ;;  %v466_v34 = vadd.f32 %v454_v26, %v453_v25  ;;  %v459_v47 = vmul.f32 %v1594_v40, %v1594_v40  ;;  %v1616_v54 = vld [vmem:[%s1549_s20 + $0xd8] sm:$0xff]  ;;  %v428_v58 = vld [vmem:[%s1549_s20 + $0xf0] sm:$0xff]  ;;  %v429_v63 = vld [vmem:[%s1549_s20 + $0x108] sm:$0xff] }
  0x4d   : > { %v460_v51 = vmul.f32 %v1601_v45, %v1601_v45  ;;  %v461_v56 = vmul.f32 %v1609_v49, %v1609_v49  ;;  %v462_v60 = vmul.f32 %v1616_v54, %v1616_v54  ;;  %v463_v1 = vmul.f32 %v428_v58, %v428_v58  ;;  %v1632_v3 = vld [vmem:[%s1549_s20 + $0x120] sm:$0xff] }
  0x4e   : > { %v437_v32 = vadd.f32 %v436_v29, %v1571_v28  ;;  %v467_v39 = vadd.f32 %v466_v34, %v455_v30  ;;  %v464_v5 = vmul.f32 %v429_v63, %v429_v63  ;;  %v465_v8 = vmul.f32 %v1632_v3, %v1632_v3 }
  0x4f   : > { %1139 = vmatpush3.bf16.msra.mxu0 %v1273_v20  ;;  %1188 = vmatpush3.bf16.msra.mxu1 %v1273_v20 }
  0x50   : > { %1140 = vmatprep.subr.bf16.mxu0 %v1356_v18  ;;  %1181 = vmatprep.subr.bf16.mxu1 %v1356_v18  ;;  %v438_v37 = vadd.f32 %v437_v32, %v1579_v31  ;;  %v468_v43 = vadd.f32 %v467_v39, %v456_v33  ;;  %v432_v39 = vld [vmem:[%s431_s12] sm:$0x1] }
  0x52   : > { %v439_v41 = vadd.f32 %v438_v37, %v1586_v36  ;;  %v469_v48 = vadd.f32 %v468_v43, %v457_v38  ;;  %v495_v37 = vlaneseq }
  0x53   : > { %1141 = vmatpush3.bf16.msra.mxu0 %v1274_v27  ;;  %1189 = vmatpush3.bf16.msra.mxu1 %v1274_v27 }
  0x54   : > { %1142 = vmatprep.subr.bf16.mxu0 %v1356_v18  ;;  %1182 = vmatprep.subr.bf16.mxu1 %v1356_v18  ;;  %v440_v46 = vadd.f32 %v439_v41, %v1594_v40  ;;  %v470_v52 = vadd.f32 %v469_v48, %v458_v42  ;;  %v1641_v38 = vshrl.u32 %v495_v37, 7 }
  0x56   : > { %v441_v50 = vadd.f32 %v440_v46, %v1601_v45  ;;  %v471_v57 = vadd.f32 %v470_v52, %v459_v47  ;;  %v1648_v41 = vsub.s32 0, %v1641_v38 }
  0x57   : > { %1143 = vmatpush3.bf16.msra.mxu0 %v1275_v35  ;;  %1190 = vmatpush3.bf16.msra.mxu1 %v1275_v35 }
  0x58   : > { %1144 = vmatprep.subr.bf16.mxu0 %v1356_v18  ;;  %1183 = vmatprep.subr.bf16.mxu1 %v1356_v18  ;;  %v442_v55 = vadd.f32 %v441_v50, %v1609_v49  ;;  %v472_v61 = vadd.f32 %v471_v57, %v460_v51 }
  0x5a   : > { %v443_v59 = vadd.f32 %v442_v55, %v1616_v54  ;;  %v473_v2 = vadd.f32 %v472_v61, %v461_v56 }
  0x5b   : > { %1145 = vmatpush3.bf16.msra.mxu0 %v1276_v44  ;;  %1191 = vmatpush3.bf16.msra.mxu1 %v1276_v44  ;;  %v434_v44 = vld [vmem:[%s433_s21] sm:$0x1] }
  0x5c   : > { %1146 = vmatprep.subr.bf16.mxu0 %v1356_v18  ;;  %1184 = vmatprep.subr.bf16.mxu1 %v1356_v18  ;;  %v444_v0 = vadd.f32 %v443_v59, %v428_v58  ;;  %v474_v6 = vadd.f32 %v473_v2, %v462_v60 }
  0x5e   : > { %v445_v4 = vadd.f32 %v444_v0, %v429_v63  ;;  %v475_v9 = vadd.f32 %v474_v6, %v463_v1 }
  0x5f   : > { %1147 = vmatpush3.bf16.msra.mxu0 %v1277_v53  ;;  %1192 = vmatpush3.bf16.msra.mxu1 %v1277_v53 }
  0x60   : > { %1148 = vmatprep.subr.bf16.mxu0 %v1356_v18  ;;  %1185 = vmatprep.subr.bf16.mxu1 %v1356_v18  ;;  %v446_v7 = vadd.f32 %v445_v4, %v1632_v3  ;;  %v476_v11 = vadd.f32 %v475_v9, %v464_v5 }
  0x62   : > { %v447_v10 = vrot.slane %v446_v7, 4  ;;  %v477_v13 = vadd.f32 %v476_v11, %v465_v8 }
  0x63   : > { %1149 = vmatpush3.bf16.msra.mxu0 %v1278_v62  ;;  %1193 = vmatpush3.bf16.msra.mxu1 %v1278_v62 }
  0x64   : > { %v448_v12 = vadd.f32 %v447_v10, %v446_v7  ;;  %v478_v15 = vrot.slane %v477_v13, 4 }
  0x66   : > { %v449_v14 = vrot.slane %v448_v12, 2  ;;  %v479_v17 = vadd.f32 %v478_v15, %v477_v13 }
  0x68   : > { %v450_v16 = vadd.f32 %v449_v14, %v448_v12  ;;  %v480_v20 = vrot.slane %v479_v17, 2 }
  0x6a   : > { %v451_v19 = vrot.slane %v450_v16, 1  ;;  %v481_v25 = vadd.f32 %v480_v20, %v479_v17 }
  0x6c   : > { %v452_v24 = vadd.f32 %v451_v19, %v450_v16  ;;  %v482_v26 = vrot.slane %v481_v25, 1 }
  0x6e   : > { %v484_v27 = vmul.f32 0.010204081, %v452_v24  ;;  %v483_v29 = vadd.f32 %v482_v26, %v481_v25 }
  0x70   : > { %v486_v30 = vmul.f32 %v484_v27, %v484_v27  ;;  %v485_v32 = vmul.f32 0.010204081, %v483_v29  ;;  %v545_v29 = vld [vmem:[%s1516_s30] sm:$0xff] }
  0x72   : > { %v487_v33 = vsub.f32 %v485_v32, %v486_v30  ;;  %v553_v30 = vld [vmem:[%s1516_s30 + $0x40] sm:$0xff] }
  0x74   : > { %v488_v34 = vmax.f32 %v487_v33, 0.0 }
  0x76   : > { %v489_v35 = vadd.f32 1e-05, %v488_v34 }
  0x78   : > { %1279 = vrsqrt.f32 %v489_v35 }
  0x85   : > { %v1280_v42 = vpop.eup %1279 }
  0x86   : > { %v491_v43 = vmul.f32 %v1280_v42, %v432_v39  ;;  %v546_v39 = vld [vmem:[%s1516_s30 + $0x8] sm:$0xff] }
  0x88   : > { %v492_v46 = vmul.f32 %v491_v43, %v484_v27  ;;  %v498_v47 = vrot.slane %v491_v43, %v1648_v41  ;;  %v554_v43 = vld [vmem:[%s1516_s30 + $0x48] sm:$0xff] }
  0x8a   : > { %v493_v48 = vsub.f32 %v434_v44, %v492_v46  ;;  %v500_v50 = vmul.f32 %v498_v47, %v1555_v21  ;;  %v501_v51 = vmul.f32 %v498_v47, %v1558_v22  ;;  %v508_v52 = vmul.f32 %v498_v47, %v1609_v49 }
  0x8b   : > { %v509_v53 = vmul.f32 %v498_v47, %v1616_v54  ;;  %v502_v55 = vmul.f32 %v498_v47, %v1561_v23  ;;  %v503_v56 = vmul.f32 %v498_v47, %v1571_v28  ;;  %v510_v57 = vmul.f32 %v498_v47, %v428_v58 }
  0x8c   : > { %v517_v59 = vrot.slane %v493_v48, %v1648_v41  ;;  %v511_v60 = vmul.f32 %v498_v47, %v429_v63  ;;  %v504_v28 = vmul.f32 %v498_v47, %v1579_v31  ;;  %v505_v58 = vmul.f32 %v498_v47, %v1586_v36 }
  0x8d   : > { %v512_v63 = vmul.f32 %v498_v47, %v1632_v3  ;;  %v506_v36 = vmul.f32 %v498_v47, %v1594_v40  ;;  %v507_v19 = vmul.f32 %v498_v47, %v1601_v45 }
  0x8e   : > { %v519_v61 = vadd.f32 %v517_v59, %v500_v50  ;;  %v520_v62 = vadd.f32 %v517_v59, %v501_v51  ;;  %v527_v0 = vadd.f32 %v517_v59, %v508_v52  ;;  %v528_v1 = vadd.f32 %v517_v59, %v509_v53  ;;  %v547_v50 = vld [vmem:[%s1516_s30 + $0x10] sm:$0xff] }
  0x8f   : > { %v521_v2 = vadd.f32 %v517_v59, %v502_v55  ;;  %v522_v21 = vadd.f32 %v517_v59, %v503_v56  ;;  %v529_v4 = vadd.f32 %v517_v59, %v510_v57  ;;  %v530_v22 = vadd.f32 %v517_v59, %v511_v60  ;;  %v555_v52 = vld [vmem:[%s1516_s30 + $0x50] sm:$0xff]  ;;  %v548_v60 = vld [vmem:[%s1516_s30 + $0x18] sm:$0xff] }
  0x90   : > { %v532_v5 = vmax.f32 %v519_v61, 0.0  ;;  %v533_v49 = vmax.f32 %v520_v62, 0.0  ;;  %v540_v6 = vmax.f32 %v527_v0, 0.0  ;;  %v541_v54 = vmax.f32 %v528_v1, 0.0  ;;  %v556_v62 = vld [vmem:[%s1516_s30 + $0x58] sm:$0xff] }
  0x91   : > { %v534_v8 = vmax.f32 %v521_v2, 0.0  ;;  %v535_v9 = vmax.f32 %v522_v21, 0.0  ;;  %v542_v10 = vmax.f32 %v529_v4, 0.0  ;;  %v543_v11 = vmax.f32 %v530_v22, 0.0  ;;  %v549_v22 = vld [vmem:[%s1516_s30 + $0x20] sm:$0xff] }
  0x92   : > { %v558_v7 = vpack.c.bf16 %v533_v49, %v532_v5  ;;  %v562_v23 = vpack.c.bf16 %v541_v54, %v540_v6  ;;  %v523_v12 = vadd.f32 %v517_v59, %v504_v28  ;;  %v524_v31 = vadd.f32 %v517_v59, %v505_v58  ;;  %v557_v49 = vld [vmem:[%s1516_s30 + $0x60] sm:$0xff]  ;;  %v550_v58 = vld [vmem:[%s1516_s30 + $0x28] sm:$0xff] }
  0x93   : > { %v559_v13 = vpack.c.bf16 %v535_v9, %v534_v8  ;;  %v563_v14 = vpack.c.bf16 %v543_v11, %v542_v10  ;;  %v531_v15 = vadd.f32 %v517_v59, %v512_v63  ;;  %v525_v25 = vadd.f32 %v517_v59, %v506_v36  ;;  %v552_v36 = vld [vmem:[%s1516_s30 + $0x38] sm:$0xff] }
  0x94   : > { %1151 = vmatmul.mubr.bf16.vlgmr.msra.gmra.mxu0 %v558_v7  ;;  %1167 = vmatmul.mubr.bf16.vlgmr.msra.gmra.mxu1 %v562_v23  ;;  %v536_v3 = vmax.f32 %v523_v12, 0.0  ;;  %v537_v16 = vmax.f32 %v524_v31, 0.0  ;;  %v526_v40 = vadd.f32 %v517_v59, %v507_v19  ;;  %v551_v12 = vld [vmem:[%s1516_s30 + $0x30] sm:$0xff] }
  0x95   : > { %1154 = vmatprep.mubr.msk.bf16.mxu0 %vm1357_vm0, %v1356_v18  ;;  %1170 = vmatprep.mubr.msk.bf16.mxu1 %vm1357_vm0, %v1356_v18  ;;  %v544_v17 = vmax.f32 %v531_v15, 0.0  ;;  %v538_v26 = vmax.f32 %v525_v25, 0.0 }
  0x96   : > { %v560_v20 = vpack.c.bf16 %v537_v16, %v536_v3  ;;  %v539_v27 = vmax.f32 %v526_v40, 0.0 }
  0x97   : > { %v564_v24 = vpack.c.bf16 %v544_v17, %v544_v17 }
  0x98   : > { %v561_v45 = vpack.c.bf16 %v539_v27, %v538_v26 }
  0x9c   : > { %1155 = vmatmul.mubr.bf16.gmra.mxu0 %v559_v13  ;;  %1171 = vmatmul.mubr.bf16.gmra.mxu1 %v563_v14 }
  0x9d   : > { %1158 = vmatprep.mubr.msk.bf16.mxu0 %vm1357_vm0, %v1356_v18  ;;  %1174 = vmatprep.mubr.msk.bf16.mxu1 %vm1357_vm0, %v1356_v18 }
  0xa4   : > { %1159 = vmatmul.mubr.bf16.gmra.mxu0 %v560_v20  ;;  %1175 = vmatmul.mubr.bf16.gmra.mxu1 %v564_v24 }
  0xa5   : > { %1162 = vmatprep.mubr.msk.bf16.mxu0 %vm1357_vm0, %v1356_v18 }
  0xac   : > { %1163 = vmatmul.mubr.bf16.gmra.mxu0 %v561_v45 }
 0x154   : > { %v663_v32 = vpop.f32.mrf.mxu0  ;;  %v695_v33 = vpop.f32.mrf.mxu1 }
 0x155   : > { %v717_v34 = vadd.f32 %v663_v32, %v545_v29  ;;  %v725_v35 = vadd.f32 %v695_v33, %v553_v30 }
 0x156   : > { %v1152_v37 = vpop.f32.mrf.mxu0  ;;  %v1168_v42 = vpop.f32.mrf.mxu1 }
 0x157   : > { %730 = vst [vmem:[%s1516_s30] sm:$0xff] %v717_v34  ;;  %738 = vst [vmem:[%s1516_s30 + $0x40] sm:$0xff] %v725_v35 }
 0x158   : > { %v666_v18 = vpop.f32.mrf.mxu0  ;;  %v698_v44 = vpop.f32.mrf.mxu1 }
 0x159   : > { %v718_v46 = vadd.f32 %v666_v18, %v546_v39  ;;  %v726_v47 = vadd.f32 %v698_v44, %v554_v43 }
 0x15a   : > { %v1153_v48 = vpop.f32.mrf.mxu0  ;;  %v1169_v51 = vpop.f32.mrf.mxu1 }
 0x15b   : > { %731 = vst [vmem:[%s1516_s30 + $0x8] sm:$0xff] %v718_v46  ;;  %739 = vst [vmem:[%s1516_s30 + $0x48] sm:$0xff] %v726_v47 }
 0x15c   : > { %v671_v53 = vpop.f32.mrf.mxu0  ;;  %v703_v55 = vpop.f32.mrf.mxu1 }
 0x15d   : > { %v719_v56 = vadd.f32 %v671_v53, %v547_v50  ;;  %v727_v57 = vadd.f32 %v703_v55, %v555_v52 }
 0x15e   : > { %v1156_v59 = vpop.f32.mrf.mxu0  ;;  %v1172_v61 = vpop.f32.mrf.mxu1 }
 0x15f   : > { %732 = vst [vmem:[%s1516_s30 + $0x10] sm:$0xff] %v719_v56  ;;  %740 = vst [vmem:[%s1516_s30 + $0x50] sm:$0xff] %v727_v57 }
 0x160   : > { %v674_v0 = vpop.f32.mrf.mxu0  ;;  %v706_v1 = vpop.f32.mrf.mxu1 }
 0x161   : > { %v720_v2 = vadd.f32 %v674_v0, %v548_v60  ;;  %v728_v21 = vadd.f32 %v706_v1, %v556_v62 }
 0x162   : > { %v1157_v4 = vpop.f32.mrf.mxu0  ;;  %v1173_v5 = vpop.f32.mrf.mxu1 }
 0x163   : > { %733 = vst [vmem:[%s1516_s30 + $0x18] sm:$0xff] %v720_v2  ;;  %741 = vst [vmem:[%s1516_s30 + $0x58] sm:$0xff] %v728_v21 }
 0x164   : > { %v679_v6 = vpop.f32.mrf.mxu0  ;;  %v711_v54 = vpop.f32.mrf.mxu1 }
 0x165   : > { %v721_v7 = vadd.f32 %v679_v6, %v549_v22  ;;  %v729_v23 = vadd.f32 %v711_v54, %v557_v49 }
 0x166   : > { %v1160_v28 = vpop.f32.mrf.mxu0  ;;  %v1176_v63 = vpop.f32.mrf.mxu1 }
 0x167   : > { %734 = vst [vmem:[%s1516_s30 + $0x20] sm:$0xff] %v721_v7  ;;  %742 = vst [vmem:[%s1516_s30 + $0x60] sm:$0xff] %v729_v23 }
 0x168   : > { %v682_v8 = vpop.f32.mrf.mxu0  ;;  %v714_v9 = vpop.f32.mrf.mxu1 }
 0x169   : > { %v722_v10 = vadd.f32 %v682_v8, %v550_v58 }
 0x16a   : > { %v1161_v11 = vpop.f32.mrf.mxu0  ;;  %v1177_v13 = vpop.f32.mrf.mxu1 }
 0x16b   : > { %735 = vst [vmem:[%s1516_s30 + $0x28] sm:$0xff] %v722_v10 }
 0x16c   : > { %v687_v14 = vpop.f32.mrf.mxu0 }
 0x16d   : > { %v723_v31 = vadd.f32 %v687_v14, %v551_v12 }
 0x16e   : > { %v1164_v15 = vpop.f32.mrf.mxu0 }
 0x16f   : > { %736 = vst [vmem:[%s1516_s30 + $0x30] sm:$0xff] %v723_v31  ;;  %746 = sbr.rel (%p1115_p2) target bundleno = 450 (0x1c2), region = 93 }
 0x170   : > { %v690_v3 = vpop.f32.mrf.mxu0 }
 0x171   : > { %v724_v16 = vadd.f32 %v690_v3, %v552_v36 }
 0x172   : > { %v1165_v17 = vpop.f32.mrf.mxu0 }
 0x173   : > { %737 = vst [vmem:[%s1516_s30 + $0x38] sm:$0xff] %v724_v16 }
 0x174   : > { %v1701_v19 = vld [vmem:[%s1516_s30] sm:$0xff]  ;;  %v1704_v20 = vld [vmem:[%s1516_s30 + $0x8] sm:$0xff]  ;;  %v1707_v24 = vld [vmem:[%s1516_s30 + $0x10] sm:$0xff]  ;;  %v773_v53 = vadd.s32 96, %v1641_v38 }
 0x175   : > { %v1710_v25 = vld [vmem:[%s1516_s30 + $0x18] sm:$0xff]  ;;  %v800_v40 = vadd.f32 %v1704_v20, %v1701_v19  ;;  %v818_v26 = vmul.f32 %v1701_v19, %v1701_v19  ;;  %v819_v27 = vmul.f32 %v1704_v20, %v1704_v20  ;;  %v820_v45 = vmul.f32 %v1707_v24, %v1707_v24  ;;  %v1721_v29 = vld [vmem:[%s1516_s30 + $0x20] sm:$0xff]  ;;  %v1727_v34 = vld [vmem:[%s1516_s30 + $0x28] sm:$0xff] }
 0x176   : > { %v821_v32 = vmul.f32 %v1710_v25, %v1710_v25  ;;  %v822_v37 = vmul.f32 %v1721_v29, %v1721_v29  ;;  %v1733_v42 = vld [vmem:[%s1516_s30 + $0x30] sm:$0xff]  ;;  %v823_v18 = vmul.f32 %v1727_v34, %v1727_v34  ;;  %v1745_v51 = vld [vmem:[%s1516_s30 + $0x40] sm:$0xff]  ;;  %v756_v57 = vld [vmem:[%s1516_s30 + $0x48] sm:$0xff]  ;;  %vm786_vm1 = vcmp.lt.s32.totalorder %v773_v53, 98 }
 0x177   : > { %v801_v30 = vadd.f32 %v800_v40, %v1707_v24  ;;  %v831_v33 = vadd.f32 %v819_v27, %v818_v26  ;;  %v824_v48 = vmul.f32 %v1733_v42, %v1733_v42  ;;  %v826_v60 = vmul.f32 %v1745_v51, %v1745_v51  ;;  %v757_v62 = vld [vmem:[%s1516_s30 + $0x50] sm:$0xff]  ;;  %v759_v1 = vld [vmem:[%s1516_s30 + $0x60] sm:$0xff]  ;;  %v758_v4 = vld [vmem:[%s1516_s30 + $0x58] sm:$0xff] }
 0x178   : > { %v827_v2 = vmul.f32 %v756_v57, %v756_v57  ;;  %v828_v22 = vmul.f32 %v757_v62, %v757_v62  ;;  %v799_v49 = vsel %vm786_vm1, %v759_v1, 0.0  ;;  %v829_v54 = vmul.f32 %v758_v4, %v758_v4 }
 0x179   : > { %v802_v35 = vadd.f32 %v801_v30, %v1710_v25  ;;  %v832_v39 = vadd.f32 %v831_v33, %v820_v45  ;;  %v830_v28 = vmul.f32 %v799_v49, %v799_v49 }
 0x17a   : > { %v1739_v46 = vld [vmem:[%s1516_s30 + $0x38] sm:$0xff] }
 0x17b   : > { %v803_v43 = vadd.f32 %v802_v35, %v1721_v29  ;;  %v833_v44 = vadd.f32 %v832_v39, %v821_v32  ;;  %v825_v55 = vmul.f32 %v1739_v46, %v1739_v46  ;;  %v854_v35 = vld [vmem:[%s390_s14] sm:$0x1] }
 0x17d   : > { %v804_v47 = vadd.f32 %v803_v43, %v1727_v34  ;;  %v834_v50 = vadd.f32 %v833_v44, %v822_v37  ;;  %v858_v43 = vld [vmem:[%s393_s5] sm:$0x1] }
 0x17f   : > { %v805_v52 = vadd.f32 %v804_v47, %v1733_v42  ;;  %v835_v56 = vadd.f32 %v834_v50, %v823_v18 }
 0x181   : > { %v806_v59 = vadd.f32 %v805_v52, %v1739_v46  ;;  %v836_v61 = vadd.f32 %v835_v56, %v824_v48 }
 0x183   : > { %v807_v0 = vadd.f32 %v806_v59, %v1745_v51  ;;  %v837_v21 = vadd.f32 %v836_v61, %v825_v55 }
 0x185   : > { %v808_v38 = vadd.f32 %v807_v0, %v756_v57  ;;  %v838_v5 = vadd.f32 %v837_v21, %v826_v60 }
 0x187   : > { %v809_v6 = vadd.f32 %v808_v38, %v757_v62  ;;  %v839_v7 = vadd.f32 %v838_v5, %v827_v2 }
 0x189   : > { %v810_v23 = vadd.f32 %v809_v6, %v758_v4  ;;  %v840_v58 = vadd.f32 %v839_v7, %v828_v22 }
 0x18b   : > { %v811_v63 = vadd.f32 %v810_v23, %v799_v49  ;;  %v841_v8 = vadd.f32 %v840_v58, %v829_v54 }
 0x18d   : > { %v812_v9 = vrot.slane %v811_v63, 4  ;;  %v842_v10 = vadd.f32 %v841_v8, %v830_v28 }
 0x18f   : > { %v813_v11 = vadd.f32 %v812_v9, %v811_v63  ;;  %v843_v12 = vrot.slane %v842_v10, 4 }
 0x191   : > { %v814_v13 = vrot.slane %v813_v11, 2  ;;  %v844_v14 = vadd.f32 %v843_v12, %v842_v10 }
 0x193   : > { %v815_v31 = vadd.f32 %v814_v13, %v813_v11  ;;  %v845_v15 = vrot.slane %v844_v14, 2 }
 0x195   : > { %v816_v36 = vrot.slane %v815_v31, 1  ;;  %v846_v3 = vadd.f32 %v845_v15, %v844_v14 }
 0x197   : > { %v817_v16 = vadd.f32 %v816_v36, %v815_v31  ;;  %v847_v17 = vrot.slane %v846_v3, 1 }
 0x199   : > { %v849_v40 = vmul.f32 0.010204081, %v817_v16  ;;  %v848_v26 = vadd.f32 %v847_v17, %v846_v3 }
 0x19b   : > { %v851_v27 = vmul.f32 %v849_v40, %v849_v40  ;;  %v850_v45 = vmul.f32 0.010204081, %v848_v26 }
 0x19d   : > { %v852_v30 = vsub.f32 %v850_v45, %v851_v27 }
 0x19f   : > { %v853_v32 = vmax.f32 %v852_v30, 0.0 }
 0x1a1   : > { %v855_v33 = vadd.f32 1e-05, %v853_v32 }
 0x1a3   : > { %1281 = vrsqrt.f32 %v855_v33 }
 0x1b0   : > { %v1282_v37 = vpop.eup %1281 }
 0x1b1   : > { %v857_v39 = vmul.f32 %v1282_v37, %v854_v35 }
 0x1b3   : > { %v859_v18 = vmul.f32 %v857_v39, %v849_v40  ;;  %v865_v44 = vrot.slane %v857_v39, %v1648_v41 }
 0x1b5   : > { %v860_v47 = vsub.f32 %v858_v43, %v859_v18  ;;  %v867_v48 = vmul.f32 %v865_v44, %v1701_v19  ;;  %v868_v50 = vmul.f32 %v865_v44, %v1704_v20  ;;  %v869_v52 = vmul.f32 %v865_v44, %v1707_v24 }
 0x1b6   : > { %v870_v53 = vmul.f32 %v865_v44, %v1710_v25  ;;  %v871_v55 = vmul.f32 %v865_v44, %v1721_v29  ;;  %v872_v56 = vmul.f32 %v865_v44, %v1727_v34  ;;  %v873_v59 = vmul.f32 %v865_v44, %v1733_v42 }
 0x1b7   : > { %v884_v60 = vrot.slane %v860_v47, %v1648_v41  ;;  %v874_v61 = vmul.f32 %v865_v44, %v1739_v46  ;;  %v875_v19 = vmul.f32 %v865_v44, %v1745_v51  ;;  %v876_v20 = vmul.f32 %v865_v44, %v756_v57 }
 0x1b8   : > { %v877_v24 = vmul.f32 %v865_v44, %v757_v62  ;;  %v878_v0 = vmul.f32 %v865_v44, %v758_v4  ;;  %v879_v25 = vmul.f32 %v865_v44, %v759_v1 }
 0x1b9   : > { %v886_v2 = vadd.f32 %v884_v60, %v867_v48  ;;  %v887_v29 = vadd.f32 %v884_v60, %v868_v50  ;;  %v888_v34 = vadd.f32 %v884_v60, %v869_v52  ;;  %v889_v42 = vadd.f32 %v884_v60, %v870_v53 }
 0x1ba   : > { %v890_v41 = vadd.f32 %v884_v60, %v871_v55  ;;  %v891_v21 = vadd.f32 %v884_v60, %v872_v56  ;;  %v892_v46 = vadd.f32 %v884_v60, %v873_v59  ;;  %v893_v38 = vadd.f32 %v884_v60, %v874_v61 }
 0x1bb   : > { %899 = vst [vmem:[%s1516_s30] sm:$0xff] %v886_v2  ;;  %900 = vst [vmem:[%s1516_s30 + $0x8] sm:$0xff] %v887_v29  ;;  %v894_v51 = vadd.f32 %v884_v60, %v875_v19  ;;  %v895_v57 = vadd.f32 %v884_v60, %v876_v20  ;;  %v896_v62 = vadd.f32 %v884_v60, %v877_v24 }
 0x1bc   : > { %901 = vst [vmem:[%s1516_s30 + $0x10] sm:$0xff] %v888_v34  ;;  %902 = vst [vmem:[%s1516_s30 + $0x18] sm:$0xff] %v889_v42  ;;  %v897_v1 = vadd.f32 %v884_v60, %v878_v0  ;;  %v898_v4 = vadd.f32 %v884_v60, %v879_v25 }
 0x1bd   : > { %903 = vst [vmem:[%s1516_s30 + $0x20] sm:$0xff] %v890_v41  ;;  %904 = vst [vmem:[%s1516_s30 + $0x28] sm:$0xff] %v891_v21 }
 0x1be   : > { %905 = vst [vmem:[%s1516_s30 + $0x30] sm:$0xff] %v892_v46  ;;  %906 = vst [vmem:[%s1516_s30 + $0x38] sm:$0xff] %v893_v38 }
 0x1bf   : > { %907 = vst [vmem:[%s1516_s30 + $0x40] sm:$0xff] %v894_v51  ;;  %908 = vst [vmem:[%s1516_s30 + $0x48] sm:$0xff] %v895_v57 }
 0x1c0   : > { %909 = vst [vmem:[%s1516_s30 + $0x50] sm:$0xff] %v896_v62  ;;  %910 = vst [vmem:[%s1516_s30 + $0x58] sm:$0xff] %v897_v1 }
 0x1c1   : > { %911 = vst [vmem:[%s1516_s30 + $0x60] sm:$0xff] %v898_v4 }
 0x1c2 PF: > { %918 = sbr.rel (!%p1461_p9) target bundleno = 459 (0x1cb), region = 97  ;;  %s1116_s5 = sshll.u32 (%p1461_p9), %s1341_s26, 3  ;;  %v973_v22 = vld [vmem:[%s1516_s30] sm:$0xff] (%p1461_p9)  ;;  %v975_v5 = vld [vmem:[%s1516_s30 + $0x8] sm:$0xff] (%p1461_p9) }
 0x1c3   : > { %v977_v49 = vld [vmem:[%s1516_s30 + $0x10] sm:$0xff] (%p1461_p9)  ;;  %s920_s19 = scalar_lea.vmem (%p1461_p9), %s1845_s6, %s1116_s5  ;;  %v979_v6 = vld [vmem:[%s1516_s30 + $0x18] sm:$0xff] (%p1461_p9) }
 0x1c4   : > { %v981_v54 = vld [vmem:[%s1516_s30 + $0x20] sm:$0xff] (%p1461_p9)  ;;  %v983_v7 = vld [vmem:[%s1516_s30 + $0x28] sm:$0xff] (%p1461_p9)  ;;  %974 = vst [vmem:[%s920_s19] sm:$0xff] (%p1461_p9), %v973_v22  ;;  %976 = vst [vmem:[%s920_s19 + $0x18] sm:$0xff] (%p1461_p9), %v975_v5 }
 0x1c5   : > { %978 = vst [vmem:[%s920_s19 + $0x30] sm:$0xff] (%p1461_p9), %v977_v49  ;;  %980 = vst [vmem:[%s920_s19 + $0x48] sm:$0xff] (%p1461_p9), %v979_v6  ;;  %v985_v23 = vld [vmem:[%s1516_s30 + $0x30] sm:$0xff] (%p1461_p9) }
 0x1c6   : > { %982 = vst [vmem:[%s920_s19 + $0x60] sm:$0xff] (%p1461_p9), %v981_v54  ;;  %984 = vst [vmem:[%s920_s19 + $0x78] sm:$0xff] (%p1461_p9), %v983_v7  ;;  %v989_v58 = vld [vmem:[%s1516_s30 + $0x40] sm:$0xff] (%p1461_p9)  ;;  %v991_v63 = vld [vmem:[%s1516_s30 + $0x48] sm:$0xff] (%p1461_p9) }
 0x1c7   : > { %986 = vst [vmem:[%s920_s19 + $0x90] sm:$0xff] %v985_v23  ;;  %990 = vst [vmem:[%s920_s19 + $0xc0] sm:$0xff] %v989_v58  ;;  %v993_v8 = vld [vmem:[%s1516_s30 + $0x50] sm:$0xff]  ;;  %v995_v9 = vld [vmem:[%s1516_s30 + $0x58] sm:$0xff] }
 0x1c8   : > { %v987_v28 = vld [vmem:[%s1516_s30 + $0x38] sm:$0xff]  ;;  %992 = vst [vmem:[%s920_s19 + $0xd8] sm:$0xff] %v991_v63  ;;  %994 = vst [vmem:[%s920_s19 + $0xf0] sm:$0xff] %v993_v8  ;;  %v997_v10 = vld [vmem:[%s1516_s30 + $0x60] sm:$0xff] }
 0x1c9   : > { %988 = vst [vmem:[%s920_s19 + $0xa8] sm:$0xff] %v987_v28  ;;  %996 = vst [vmem:[%s920_s19 + $0x108] sm:$0xff] %v995_v9 }
 0x1ca   : > { %998 = vst [vmem:[%s920_s19 + $0x120] sm:$0xff] %v997_v10 }
 0x1cb PF: > { %s16_s29 = sadd.s32 1, %s1353_s29   ;;  %s1854_s15 = sld [smem:[#allocation4_spill]] }
 0x1cc   : > { %p13_p3 = scmp.ge.s32.totalorder %s16_s29, 11   ;;  %s1855_s20 = sld [smem:[#allocation5_spill]] }
 0x1cd   : > { %s1856_s21 = smov %s1325_s22  ;;  %s1857_s22 = smov %s1466_s16 }
 0x1ce   : > { %s1858_s23 = smov %s1333_s24  ;;  %s1859_s24 = smov %s1469_s17 }
 0x1cf   : > { %s1860_s25 = smov %s1345_s27  ;;  %s1861_s26 = smov %s1349_s28 }
 0x1d0   :  { %15 = sbr.rel (!%p13_p3) target bundleno = 7 (0x7), region = 175 }
 0x1d1   : > { %s1862_s27 = smov %s1854_s15 }
 0x1d2   : > { %s1863_s28 = smov %s1855_s20 }

</bundles_post_ra>
